<compile_context>
chip_gen: v7x
topology: tpu7x:2x2x1
jax: 0.10.0
libtpu: 0.0.40
codegen_flags: <defaults>
</compile_context>

<pallas_src>
import math

import jax
import jax.numpy as jnp
from jax.experimental import pallas as pl
from jax.experimental.pallas import tpu as pltpu


def _fused_embed_kernel(x_ref, book_ref, pe_ref, book_emb_ref,
                        gamma_ref, beta_ref, out_ref):
    D = x_ref.shape[-1]
    scale = jnp.float32(math.sqrt(D))

    # Pre-gathered token rows (native dtype) -> f32, scaled, plus PE.
    x = x_ref[...].astype(jnp.float32) * scale + pe_ref[...]      # (TM, D)

    # Book-type embedding: 4-row table -> chained VPU selects (no MXU push).
    book = book_ref[...]                                          # (TM, 1) i32
    be = book_emb_ref[...].astype(jnp.float32)                    # (4, D)
    bsel = jnp.where(book == 0, be[0:1, :],
           jnp.where(book == 1, be[1:2, :],
           jnp.where(book == 2, be[2:3, :], be[3:4, :])))         # (TM, D)
    x = x + bsel

    # LayerNorm over the embedding dim; centered two-pass variance
    # (robust vs. E[x^2]-mean^2 cancellation, matches torch.nn.LayerNorm).
    mean = jnp.mean(x, axis=-1, keepdims=True)
    xc = x - mean
    var = jnp.mean(xc * xc, axis=-1, keepdims=True)
    inv = jax.lax.rsqrt(var + jnp.float32(1e-5))
    gamma = gamma_ref[...].astype(jnp.float32)
    beta = beta_ref[...].astype(jnp.float32)
    y = xc * (inv * gamma) + beta

    out_ref[...] = y.astype(out_ref.dtype)


def _pick_rows_per_block(seq_len, batch, d, in_bytes, out_bytes,
                         vmem_budget_bytes, min_grid_steps=8):
    """Largest multiple-of-8 divisor of seq_len that fits the VMEM budget.

    Budget per row: double-buffered x / pe / out tiles plus ~3 full f32
    temporaries kept live by the LayerNorm body.  Also keeps the grid long
    enough (>= min_grid_steps when possible) to feed both v7x TensorCores.
    """
    per_row = d * (2 * (in_bytes + 4 + out_bytes) + 3 * 4) + 2 * 4
    tm = int(vmem_budget_bytes // per_row)
    tm = max(8, min(tm, seq_len) // 8 * 8)
    while seq_len % tm != 0:
        tm -= 8
    # Prefer >= min_grid_steps grid steps (megacore / v7x 2-TC balance),
    # but never shrink below 64-row tiles just to lengthen the grid.
    while tm > 64 and batch * (seq_len // tm) < min_grid_steps:
        nxt = tm - 8
        while seq_len % nxt != 0:
            nxt -= 8
        if nxt < 64:
            break
        tm = nxt
    return tm


def verse_aware_embeddings(token_ids, book_types, emb_weight, book_emb,
                           pe_table, gamma, beta, *,
                           out_dtype=None,
                           vmem_budget_bytes=40 * 1024 * 1024,
                           vmem_limit_bytes=48 * 1024 * 1024):
    B, S = token_ids.shape
    V, D = emb_weight.shape
    assert S % 8 == 0, "sequence length must be a multiple of 8"

    N = B * S
    out_dtype = emb_weight.dtype if out_dtype is None else out_dtype
    in_bytes = jnp.dtype(emb_weight.dtype).itemsize
    out_bytes = jnp.dtype(out_dtype).itemsize

    TM = _pick_rows_per_block(S, B, D, in_bytes, out_bytes, vmem_budget_bytes)
    n_pe_blocks = S // TM

    # Token-embedding gather in XLA, in the table's NATIVE dtype (no f32 copy
    # of the table, no widened intermediate stream).
    tok_flat = token_ids.reshape(N).astype(jnp.int32)
    x_flat = emb_weight[tok_flat]                               # (N, D)

    book_flat = book_types.reshape(N, 1).astype(jnp.int32)      # (N, 1)
    pe_s = pe_table[:S].astype(jnp.float32)                     # (S, D)
    gamma2 = gamma.reshape(1, D)
    beta2 = beta.reshape(1, D)

    # Flat row-block index for x / book / out: batch-major layout of (B*S, D).
    row_index = lambda p, b: (b * n_pe_blocks + p, 0)

    out_flat = pl.pallas_call(
        _fused_embed_kernel,
        out_shape=jax.ShapeDtypeStruct((N, D), out_dtype),
        grid_spec=pltpu.PrefetchScalarGridSpec(
            num_scalar_prefetch=0,
            # Batch is the fastest grid axis so the PE block index is constant
            # across consecutive steps -> its DMA is skipped (B-1)/B of steps.
            grid=(n_pe_blocks, B),
            in_specs=[
                pl.BlockSpec((TM, D), row_index),              # gathered rows
                pl.BlockSpec((TM, 1), row_index),              # book-type ids
                pl.BlockSpec((TM, D), lambda p, b: (p, 0)),    # positional enc
                pl.BlockSpec((4, D), lambda p, b: (0, 0)),     # book table
                pl.BlockSpec((1, D), lambda p, b: (0, 0)),     # LN gamma
                pl.BlockSpec((1, D), lambda p, b: (0, 0)),     # LN beta
            ],
            out_specs=pl.BlockSpec((TM, D), row_index),
        ),
        compiler_params=pltpu.CompilerParams(
            dimension_semantics=("parallel", "parallel"),
            vmem_limit_bytes=vmem_limit_bytes),
    )(x_flat, book_flat, pe_s, book_emb, gamma2, beta2)

    return out_flat.reshape(B, S, D)


def make_sinusoidal_pe(max_len, d_model):
    position = jnp.arange(max_len, dtype=jnp.float32)[:, None]
    div_term = jnp.exp(jnp.arange(0, d_model, 2, dtype=jnp.float32)
                       * (-math.log(10000.0) / d_model))
    pe = jnp.zeros((max_len, d_model), dtype=jnp.float32)
    pe = pe.at[:, 0::2].set(jnp.sin(position * div_term))
    pe = pe.at[:, 1::2].set(jnp.cos(position * div_term))
    return pe


def ref_forward(token_ids, book_types, emb_weight, book_emb, pe_table,
                gamma, beta):
    D = emb_weight.shape[1]
    S = token_ids.shape[1]
    x = emb_weight[token_ids].astype(jnp.float32) * math.sqrt(D)
    x = x + pe_table[None, :S]
    x = x + book_emb[book_types].astype(jnp.float32)
    mean = jnp.mean(x, axis=-1, keepdims=True)
    var = jnp.mean(jnp.square(x - mean), axis=-1, keepdims=True)
    xn = (x - mean) / jnp.sqrt(var + 1e-5)
    return xn * gamma + beta


if __name__ == "__main__":
    B, S, D = 2, 128, 128        # lane-dense D; small demo shapes
    V = 256
    MAX_SEQ = 256
    PAD_IDX = 0

    key = jax.random.PRNGKey(0)
    k1, k2, k3, k4, k5, k6 = jax.random.split(key, 6)

    # Token embedding: xavier_uniform, padding row zeroed.
    bound = math.sqrt(6.0 / (V + D))
    emb_weight = jax.random.uniform(k1, (V, D), jnp.float32, -bound, bound)
    emb_weight = emb_weight.at[PAD_IDX].set(0.0)
    # Book-type embedding: default nn.Embedding init ~ N(0, 1).
    book_emb = jax.random.normal(k2, (4, D), dtype=jnp.float32)
    # LayerNorm affine params (perturbed so the affine path is exercised).
    gamma = 1.0 + 0.1 * jax.random.normal(k5, (D,), dtype=jnp.float32)
    beta = 0.1 * jax.random.normal(k6, (D,), dtype=jnp.float32)
    # Sinusoidal positional encoding table.
    pe_table = make_sinusoidal_pe(MAX_SEQ, D)

    # Inputs.
    token_ids = jax.random.randint(k3, (B, S), 0, V, dtype=jnp.int32)
    book_types = jax.random.randint(k4, (B, S), 0, 4, dtype=jnp.int32)

    # Jit so the small per-call prep (pe slice, reshapes) is fused/hoisted.
    fwd = jax.jit(verse_aware_embeddings)
    out = fwd(token_ids, book_types, emb_weight, book_emb, pe_table,
              gamma, beta)
    out = jax.block_until_ready(out)

    ref = ref_forward(token_ids, book_types, emb_weight, book_emb, pe_table,
                      gamma, beta)
    assert out.shape == (B, S, D)
    assert jnp.allclose(out.astype(jnp.float32), ref, atol=1e-4, rtol=1e-4), (
        float(jnp.max(jnp.abs(out.astype(jnp.float32) - ref))))

    print("KERNEL_OK")
</pallas_src>

<mosaic_0001>
module attributes {stable_mosaic.version = 11 : i64} {
  func.func @_fused_embed_kernel(%arg0: i32, %arg1: i32, %arg2: memref<64x128xf32, #tpu.memory_space<vmem>>, %arg3: memref<64x1xi32, #tpu.memory_space<vmem>>, %arg4: memref<64x128xf32, #tpu.memory_space<vmem>>, %arg5: memref<4x128xf32, #tpu.memory_space<vmem>>, %arg6: memref<1x128xf32, #tpu.memory_space<vmem>>, %arg7: memref<1x128xf32, #tpu.memory_space<vmem>>, %arg8: memref<64x128xf32, #tpu.memory_space<vmem>>) attributes {dimension_semantics = [#tpu.dimension_semantics<parallel>, #tpu.dimension_semantics<parallel>], iteration_bounds = array<i64: 2, 2>, scalar_prefetch = 0 : i64, scratch_operands = 0 : i64, tpu.core_type = #tpu.core_type<tc>, window_params = [{transform_indices = @transform_0, window_bounds = array<i64: 64, 128>}, {transform_indices = @transform_1, window_bounds = array<i64: 64, 1>}, {transform_indices = @transform_2, window_bounds = array<i64: 64, 128>}, {pipeline_mode = #tpu.pipeline_mode<synchronous>, transform_indices = @transform_3, window_bounds = array<i64: 4, 128>}, {pipeline_mode = #tpu.pipeline_mode<synchronous>, transform_indices = @transform_4, window_bounds = array<i64: 1, 128>}, {pipeline_mode = #tpu.pipeline_mode<synchronous>, transform_indices = @transform_5, window_bounds = array<i64: 1, 128>}, {transform_indices = @transform_6, window_bounds = array<i64: 64, 128>}]} {
    %c0 = arith.constant 0 : index
    %c0_0 = arith.constant 0 : index
    %0 = vector.load %arg2[%c0, %c0_0] : memref<64x128xf32, #tpu.memory_space<vmem>>, vector<64x128xf32>
    %cst = arith.constant 11.3137083 : f32
    %1 = vector.broadcast %cst : f32 to vector<64x128xf32>
    %2 = arith.mulf %0, %1 : vector<64x128xf32>
    %c0_1 = arith.constant 0 : index
    %c0_2 = arith.constant 0 : index
    %3 = vector.load %arg4[%c0_1, %c0_2] : memref<64x128xf32, #tpu.memory_space<vmem>>, vector<64x128xf32>
    %4 = arith.addf %2, %3 : vector<64x128xf32>
    %c0_3 = arith.constant 0 : index
    %c0_4 = arith.constant 0 : index
    %5 = vector.load %arg3[%c0_3, %c0_4] : memref<64x1xi32, #tpu.memory_space<vmem>>, vector<64x1xi32>
    %c0_5 = arith.constant 0 : index
    %c0_6 = arith.constant 0 : index
    %6 = vector.load %arg5[%c0_5, %c0_6] : memref<4x128xf32, #tpu.memory_space<vmem>>, vector<4x128xf32>
    %c0_i32 = arith.constant 0 : i32
    %7 = vector.broadcast %c0_i32 : i32 to vector<64x1xi32>
    %8 = arith.cmpi eq, %5, %7 : vector<64x1xi32>
    %9 = vector.extract_strided_slice %6 {offsets = [0, 0], sizes = [1, 128], strides = [1, 1]} : vector<4x128xf32> to vector<1x128xf32>
    %c1_i32 = arith.constant 1 : i32
    %10 = vector.broadcast %c1_i32 : i32 to vector<64x1xi32>
    %11 = arith.cmpi eq, %5, %10 : vector<64x1xi32>
    %12 = vector.extract_strided_slice %6 {offsets = [1, 0], sizes = [1, 128], strides = [1, 1]} : vector<4x128xf32> to vector<1x128xf32>
    %c2_i32 = arith.constant 2 : i32
    %13 = vector.broadcast %c2_i32 : i32 to vector<64x1xi32>
    %14 = arith.cmpi eq, %5, %13 : vector<64x1xi32>
    %15 = vector.extract_strided_slice %6 {offsets = [2, 0], sizes = [1, 128], strides = [1, 1]} : vector<4x128xf32> to vector<1x128xf32>
    %16 = vector.extract_strided_slice %6 {offsets = [3, 0], sizes = [1, 128], strides = [1, 1]} : vector<4x128xf32> to vector<1x128xf32>
    %17 = vector.shape_cast %14 : vector<64x1xi1> to vector<64x1xi1>
    %18 = vector.broadcast %17 : vector<64x1xi1> to vector<64x128xi1>
    %19 = vector.shape_cast %15 : vector<1x128xf32> to vector<1x128xf32>
    %20 = vector.broadcast %19 : vector<1x128xf32> to vector<64x128xf32>
    %21 = vector.shape_cast %16 : vector<1x128xf32> to vector<1x128xf32>
    %22 = vector.broadcast %21 : vector<1x128xf32> to vector<64x128xf32>
    %23 = arith.select %18, %20, %22 : vector<64x128xi1>, vector<64x128xf32>
    %24 = vector.shape_cast %11 : vector<64x1xi1> to vector<64x1xi1>
    %25 = vector.broadcast %24 : vector<64x1xi1> to vector<64x128xi1>
    %26 = vector.shape_cast %12 : vector<1x128xf32> to vector<1x128xf32>
    %27 = vector.broadcast %26 : vector<1x128xf32> to vector<64x128xf32>
    %28 = arith.select %25, %27, %23 : vector<64x128xi1>, vector<64x128xf32>
    %29 = vector.shape_cast %8 : vector<64x1xi1> to vector<64x1xi1>
    %30 = vector.broadcast %29 : vector<64x1xi1> to vector<64x128xi1>
    %31 = vector.shape_cast %9 : vector<1x128xf32> to vector<1x128xf32>
    %32 = vector.broadcast %31 : vector<1x128xf32> to vector<64x128xf32>
    %33 = arith.select %30, %32, %28 : vector<64x128xi1>, vector<64x128xf32>
    %34 = arith.addf %4, %33 : vector<64x128xf32>
    %cst_7 = arith.constant dense<0.000000e+00> : vector<64xf32>
    %35 = vector.multi_reduction <add>, %34, %cst_7 [1] : vector<64x128xf32> to vector<64xf32>
    %36 = vector.shape_cast %35 : vector<64xf32> to vector<64x1xf32>
    %cst_8 = arith.constant 1.280000e+02 : f32
    %37 = vector.broadcast %cst_8 : f32 to vector<64x1xf32>
    %38 = arith.divf %36, %37 : vector<64x1xf32>
    %39 = vector.broadcast %38 : vector<64x1xf32> to vector<64x128xf32>
    %40 = arith.subf %34, %39 : vector<64x128xf32>
    %41 = arith.mulf %40, %40 : vector<64x128xf32>
    %cst_9 = arith.constant dense<0.000000e+00> : vector<64xf32>
    %42 = vector.multi_reduction <add>, %41, %cst_9 [1] : vector<64x128xf32> to vector<64xf32>
    %43 = vector.shape_cast %42 : vector<64xf32> to vector<64x1xf32>
    %cst_10 = arith.constant 1.280000e+02 : f32
    %44 = vector.broadcast %cst_10 : f32 to vector<64x1xf32>
    %45 = arith.divf %43, %44 : vector<64x1xf32>
    %cst_11 = arith.constant 9.99999974E-6 : f32
    %46 = vector.broadcast %cst_11 : f32 to vector<64x1xf32>
    %47 = arith.addf %45, %46 : vector<64x1xf32>
    %48 = math.rsqrt %47 : vector<64x1xf32>
    %c0_12 = arith.constant 0 : index
    %c0_13 = arith.constant 0 : index
    %49 = vector.load %arg6[%c0_12, %c0_13] : memref<1x128xf32, #tpu.memory_space<vmem>>, vector<1x128xf32>
    %c0_14 = arith.constant 0 : index
    %c0_15 = arith.constant 0 : index
    %50 = vector.load %arg7[%c0_14, %c0_15] : memref<1x128xf32, #tpu.memory_space<vmem>>, vector<1x128xf32>
    %51 = vector.broadcast %48 : vector<64x1xf32> to vector<64x128xf32>
    %52 = vector.broadcast %49 : vector<1x128xf32> to vector<64x128xf32>
    %53 = arith.mulf %51, %52 : vector<64x128xf32>
    %54 = arith.mulf %40, %53 : vector<64x128xf32>
    %55 = vector.broadcast %50 : vector<1x128xf32> to vector<64x128xf32>
    %56 = arith.addf %54, %55 : vector<64x128xf32>
    %c0_16 = arith.constant 0 : index
    %c0_17 = arith.constant 0 : index
    %57 = vector.load %arg8[%c0_16, %c0_17] : memref<64x128xf32, #tpu.memory_space<vmem>>, vector<64x128xf32>
    tpu.vector_store %arg8[%c0_16, %c0_17], %56 {strides = array<i32>} : memref<64x128xf32, #tpu.memory_space<vmem>>, vector<64x128xf32>,
    return
  }
  func.func @transform_0(%arg0: i32, %arg1: i32) -> (i32, i32) {
    %c2_i32 = arith.constant 2 : i32
    %0 = arith.muli %arg1, %c2_i32 : i32
    %1 = arith.addi %0, %arg0 : i32
    %c0_i32 = arith.constant 0 : i32
    %c0_i32_0 = arith.constant 0 : i32
    return %1, %c0_i32 : i32, i32
  }
  func.func @transform_1(%arg0: i32, %arg1: i32) -> (i32, i32) {
    %c2_i32 = arith.constant 2 : i32
    %0 = arith.muli %arg1, %c2_i32 : i32
    %1 = arith.addi %0, %arg0 : i32
    %c0_i32 = arith.constant 0 : i32
    %c0_i32_0 = arith.constant 0 : i32
    return %1, %c0_i32 : i32, i32
  }
  func.func @transform_2(%arg0: i32, %arg1: i32) -> (i32, i32) {
    %c0_i32 = arith.constant 0 : i32
    %c0_i32_0 = arith.constant 0 : i32
    return %arg0, %c0_i32 : i32, i32
  }
  func.func @transform_3(%arg0: i32, %arg1: i32) -> (i32, i32) {
    %c0_i32 = arith.constant 0 : i32
    %c0_i32_0 = arith.constant 0 : i32
    %c0_i32_1 = arith.constant 0 : i32
    return %c0_i32, %c0_i32_0 : i32, i32
  }
  func.func @transform_4(%arg0: i32, %arg1: i32) -> (i32, i32) {
    %c0_i32 = arith.constant 0 : i32
    %c0_i32_0 = arith.constant 0 : i32
    %c0_i32_1 = arith.constant 0 : i32
    return %c0_i32, %c0_i32_0 : i32, i32
  }
  func.func @transform_5(%arg0: i32, %arg1: i32) -> (i32, i32) {
    %c0_i32 = arith.constant 0 : i32
    %c0_i32_0 = arith.constant 0 : i32
    %c0_i32_1 = arith.constant 0 : i32
    return %c0_i32, %c0_i32_0 : i32, i32
  }
  func.func @transform_6(%arg0: i32, %arg1: i32) -> (i32, i32) {
    %c2_i32 = arith.constant 2 : i32
    %0 = arith.muli %arg1, %c2_i32 : i32
    %1 = arith.addi %0, %arg0 : i32
    %c0_i32 = arith.constant 0 : i32
    %c0_i32_0 = arith.constant 0 : i32
    return %1, %c0_i32 : i32, i32
  }
}

</mosaic_0001>

<bundles_post_ra>
// kernel: verse_aware_embeddings.1
= control target key start
LH: loop header
LB: loop body
LE: loop exit
PB: predicated region body
PF: predicated region fallthrough
CT: control target
= control target key end

     0   :  { %11 = vsyncpa [#allocation3], 0  ;;  %s1445_s0 = inlined_call_operand.vmem [shape: f32[256,128], index: 0, kind: input, shape index: {}]   ;;  %s1446_s1 = inlined_call_operand.vmem [shape: s32[256,1], index: 1, kind: input, shape index: {}]   ;;  %s1447_s2 = inlined_call_operand.vmem [shape: f32[128,128], index: 2, kind: input, shape index: {}]   ;;  %s1448_s3 = inlined_call_operand.vmem [shape: f32[4,128], index: 3, kind: input, shape index: {}]   ;;  %s1449_s4 = inlined_call_operand.vmem [shape: f32[1,128], index: 4, kind: input, shape index: {}]   ;;  %s1450_s5 = inlined_call_operand.vmem [shape: f32[1,128], index: 5, kind: input, shape index: {}]   ;;  %s1451_s6 = inlined_call_operand.hbm [shape: f32[256,128], index: 6, kind: output, shape index: {}]  }
   0x1   :  { %13 = vsyncpa [#allocation3 + $0x1], 0  ;;  %s1074_s21 = smov 0   ;;  %s1076_s22 = smov 0  }
   0x2   :  { %s1078_s23 = smov 0   ;;  %s1080_s24 = smov 0  }
   0x3   :  { %s1082_s25 = smov 0   ;;  %s1084_s26 = smov 0  }
   0x4   :  { %s1086_s27 = smov 0   ;;  %s1088_s28 = smov 0  }
   0x5 LB: > { %s818_s29 = sadd.s32 4294967295, %s1033_s28   ;;  %s819_s30 = sadd.s32 4294967294, %s1033_s28   ;;  %s1033_s28 = sphi %s1088_s28, %s19_s28   ;;  %s1029_s27 = sphi %s1086_s27, %s1460_s27   ;;  %s1025_s26 = sphi %s1084_s26, %s1459_s26   ;;  %s1021_s25 = sphi %s1082_s25, %s1458_s25   ;;  %s1017_s24 = sphi %s1080_s24, %s1457_s24   ;;  %s1013_s23 = sphi %s1078_s23, %s1456_s23   ;;  %s1009_s22 = sphi %s1076_s22, %s1455_s22   ;;  %s1005_s21 = sphi %s1074_s21, %s1454_s21  }
   0x6   : > { %s28_s7 = sadd.s32 1, %s1025_s26  ;;  %s31_s8 = sadd.s32 1, %s1029_s27 }
   0x7   : > { %p29_p0 = scmp.ge.s32.totalorder %s28_s7, 2  ;;  %s824_s9 = sshll.u32 %s1025_s26, 1 }
   0x8   : > { %s185_s10 = sadd.s32 %s1029_s27, %s824_s9  ;;  %s191_s11 = sadd.s32 1, %s1013_s23 }
   0x9   : > { %s1462_s7 = smov (%p29_p0, %s28_s7), 0  ;;  %s1464_s8 = smov (!%p29_p0, %s31_s8), %s1029_s27 }
   0xa   : > { %s825_s12 = sshll.u32 %s1462_s7, 1  ;;  %p201_p1 = scmp.ne.s32.totalorder %s1013_s23, %s1009_s22 }
   0xb   : > { %p33_p2 = scmp.ge.s32.totalorder %s1464_s8, 2  ;;  %p202_p3 = scmp.eq.s32.totalorder %s818_s29, 3 }
   0xc   : > { %p207_p4 = scmp.ne.s32.totalorder %s1009_s22, %s1005_s21  ;;  %p208_p5 = scmp.eq.s32.totalorder %s819_s30, 3 }
   0xd   : > { %s1466_s8 = smov (%p33_p2, %s1464_s8), 0  ;;  %p1131_p6 = por %p202_p3, %p201_p1 }
   0xe   : > { %p1135_p7 = por %p208_p5, %p207_p4  ;;  %s187_s15 = sadd.s32 %s825_s12, %s1466_s8 }
   0xf   : > { %p828_p8 = scmp.ge.s32.totalorder %s1033_s28, 1  ;;  %s188_s16 = ssub.s32 %s185_s10, %s187_s15 }
  0x10   : > { %p270_p9 = scmp.lt.s32.totalorder %s1033_s28, 5  ;;  %p189_p10 = scmp.eq.s32.totalorder %s188_s16, 0 }
  0x12   : > { %p271_p11 = pnand %p828_p8, %p270_p9 }
  0x13   : > { %s1143_s17 = scalar_select %p189_p10, %s1013_s23, %s191_s11  }
  0x14   : > { %274 = sbr.rel (%p271_p11) target bundleno = 539 (0x21b), region = 44  ;;  %s830_s18 = sshll.u32 (!%p271_p11), %s1017_s24, 1  ;;  %v1035_v0 = vmov (!%p271_p11), 0   ;;  %v448_v41 = vlaneseq (!%p271_p11)  ;;  %v383_v53 = vld [vmem:[%s1448_s3] sm:$0xf] (!%p271_p11) }
  0x15   : > { %922 = vset.pattern.permute.xlu1 (!%p271_p11), %v1035_v0  ;;  %921 = vset.pattern.permute.xlu0 (!%p271_p11), %v1035_v0  ;;  %s1149_s19 = sadd.s32 (!%p271_p11), %s1021_s25, %s830_s18  ;;  %s836_s10 = sshll.u32 (!%p271_p11), %s1021_s25, 3 }
  0x16   : > { %s831_s20 = sshll.u32 (!%p271_p11), %s1149_s19, 3  ;;  %p335_p13 = scmp.lt.s32.totalorder (!%p271_p11), %s836_s10, 15  ;;  %v449_v44 = vshrl.u32 (!%p271_p11), %v448_v41, 7 }
  0x17   : > { %p317_p12 = scmp.lt.s32.totalorder (!%p271_p11), %s831_s20, 31  ;;  %s846_s16 = sshll.u32 (!%p271_p11), %s1149_s19, 10 }
  0x18   : > { %v450_v47 = vsub.s32 (!%p271_p11), 2, %v449_v44  ;;  %v454_v48 = vsub.s32 (!%p271_p11), 3, %v449_v44  ;;  %v506_v54 = vsub.s32 (!%p271_p11), 1, %v449_v44  ;;  %v558_v55 = vsub.s32 (!%p271_p11), 0, %v449_v44 }
  0x1a   : > { %v1233_v59 = vrot.slane (!%p271_p11), %v383_v53, %v450_v47  ;;  %v1235_v60 = vrot.slane (!%p271_p11), %v383_v53, %v454_v48 }
  0x1b   : > { %s1468_s20 = smov (!%p317_p12, %s831_s20), 31  ;;  %s1470_s10 = smov (!%p335_p13, %s836_s10), 15 }
  0x1c   : > { %s832_s29 = sshll.u32 %s1468_s20, 3  ;;  %s837_s25 = sshll.u32 %s1470_s10, 3 }
  0x1d   : > { %s330_s24 = scalar_lea.vmem %s1446_s1, %s832_s29  ;;  %s1216_s15 = scalar_lea.vmem %s1445_s0, %s832_s29 }
  0x1e   : > { %v1160_v1 = vld [vmem:[%s330_s24 + $0x10] sm:$0xff]  ;;  %v375_v2 = vld [vmem:[%s330_s24] sm:$0xff]  ;;  %v1162_v3 = vld [vmem:[%s330_s24 + $0x18] sm:$0xff]  ;;  %s1230_s30 = scalar_lea.vmem %s1447_s2, %s837_s25  ;;  %s311_s10 = sand.u32 1, %s1009_s22  }
  0x1f   : > { %vm402_vm0 = vcmp.eq.s32.totalorder %v1160_v1, 2  ;;  %vm400_vm1 = vcmp.eq.s32.totalorder %v375_v2, 2  ;;  %vm403_vm2 = vcmp.eq.s32.totalorder %v1162_v3, 2  ;;  %v376_v4 = vld [vmem:[%s330_s24 + $0x8] sm:$0xff]  ;;  %v379_v8 = vld [vmem:[%s330_s24 + $0x20] sm:$0xff]  ;;  %v382_v11 = vld [vmem:[%s330_s24 + $0x38] sm:$0xff] }
  0x20   : > { %v410_v5 = vsel %vm402_vm0, 1, %v1035_v0  ;;  %v408_v6 = vsel %vm400_vm1, 1, %v1035_v0  ;;  %vm401_vm3 = vcmp.eq.s32.totalorder %v376_v4, 2  ;;  %v380_v7 = vld [vmem:[%s330_s24 + $0x28] sm:$0xff]  ;;  %v411_v9 = vsel %vm403_vm2, 1, %v1035_v0  ;;  %v381_v12 = vld [vmem:[%s330_s24 + $0x30] sm:$0xff] }
  0x21   : > { %423 = vperm.xlu1 %922, %v410_v5   ;;  %417 = vperm.xlu0 %921, %v408_v6   ;;  %v409_v10 = vsel %vm401_vm3, 1, %v1035_v0  ;;  %vm405_vm4 = vcmp.eq.s32.totalorder %v380_v7, 2  ;;  %vm404_vm5 = vcmp.eq.s32.totalorder %v379_v8, 2  ;;  %vm407_vm6 = vcmp.eq.s32.totalorder %v382_v11, 2  ;;  %v344_v51 = vld [vmem:[%s1216_s15 + $0x8] sm:$0xff]  ;;  %v343_v52 = vld [vmem:[%s1216_s15] sm:$0xff] }
  0x22   : > { %v413_v13 = vsel %vm405_vm4, 1, %v1035_v0  ;;  %v412_v14 = vsel %vm404_vm5, 1, %v1035_v0  ;;  %vm406_vm7 = vcmp.eq.s32.totalorder %v381_v12, 2  ;;  %v415_v15 = vsel %vm407_vm6, 1, %v1035_v0  ;;  %v345_v58 = vld [vmem:[%s1216_s15 + $0x10] sm:$0xff]  ;;  %v360_v63 = vld [vmem:[%s1230_s30 + $0x8] sm:$0xff] }
  0x23   : > { %v414_v16 = vsel %vm406_vm7, 1, %v1035_v0  ;;  %vm393_vm8 = vcmp.eq.s32.totalorder %v376_v4, 1  ;;  %vm392_vm9 = vcmp.eq.s32.totalorder %v375_v2, 1  ;;  %vm395_vm10 = vcmp.eq.s32.totalorder %v1162_v3, 1  ;;  %s829_s11 = sshll.u32 %s311_s10, 6  ;;  %s1393_s19 = scalar_lea.sflag [#allocation3], %s311_s10 }
  0x24   : > { %v465_v17 = vsel %vm393_vm8, 1, %v1035_v0  ;;  %v464_v18 = vsel %vm392_vm9, 1, %v1035_v0  ;;  %vm394_vm11 = vcmp.eq.s32.totalorder %v1160_v1, 1  ;;  %v467_v19 = vsel %vm395_vm10, 1, %v1035_v0  ;;  %s1366_s25 = scalar_lea.vmem [#allocation2], %s829_s11  ;;  %s1036_s24 = smov [#allocation2]  }
  0x25   : > { %426 = vperm.xlu1 %922, %v411_v9   ;;  %420 = vperm.xlu0 %921, %v409_v10   ;;  %v466_v20 = vsel %vm394_vm11, 1, %v1035_v0  ;;  %vm397_vm12 = vcmp.eq.s32.totalorder %v380_v7, 1  ;;  %vm396_vm13 = vcmp.eq.s32.totalorder %v379_v8, 1  ;;  %vm399_vm14 = vcmp.eq.s32.totalorder %v382_v11, 1  ;;  %s719_s18 = sshll.u32 %s1366_s25, 4  ;;  %s943_s11 = sshll.u32 %s1036_s24, 4  ;;  %s1388_s18 = int_to_ptr.vmem [resolvable:$true] %s719_s18  ;;  %s944_s11 = int_to_ptr.vmem [resolvable:$false] %s943_s11 }
  0x26   : > { %v469_v21 = vsel %vm397_vm12, 1, %v1035_v0  ;;  %v468_v22 = vsel %vm396_vm13, 1, %v1035_v0  ;;  %vm398_vm15 = vcmp.eq.s32.totalorder %v381_v12, 1  ;;  %v471_v23 = vsel %vm399_vm14, 1, %v1035_v0  ;;  %s939_s9 = scalar_lea.vmem %s1388_s18, 1024  ;;  %s945_s12 = scalar_lea.vmem %s944_s11, 2048 }
  0x27   : > { %v470_v24 = vsel %vm398_vm15, 1, %v1035_v0  ;;  %vm385_vm0 = vcmp.eq.s32.totalorder %v376_v4, 0  ;;  %vm384_vm1 = vcmp.eq.s32.totalorder %v375_v2, 0  ;;  %vm387_vm2 = vcmp.eq.s32.totalorder %v1162_v3, 0  ;;  %v347_v3 = vld [vmem:[%s1216_s15 + $0x20] sm:$0xff]  ;;  %p940_p0 = scmp.ne.s32.totalorder %s1388_s18, %s939_s9  ;;  %p946_p3 = scmp.lt.s32.totalorder %s1388_s18, %s944_s11 }
  0x28   : > { %v517_v25 = vsel %vm385_vm0, 1, %v1035_v0  ;;  %v516_v26 = vsel %vm384_vm1, 1, %v1035_v0  ;;  %vm386_vm3 = vcmp.eq.s32.totalorder %v1160_v1, 0  ;;  %v519_v27 = vsel %vm387_vm2, 1, %v1035_v0  ;;  %v346_v1 = vld [vmem:[%s1216_s15 + $0x18] sm:$0xff]  ;;  %p947_p4 = scmp.lt.s32.totalorder %s945_s12, %s939_s9 }
  0x29   : > { %432 = vperm.xlu1 %922, %v413_v13   ;;  %429 = vperm.xlu0 %921, %v412_v14   ;;  %v518_v28 = vsel %vm386_vm3, 1, %v1035_v0  ;;  %vm389_vm4 = vcmp.eq.s32.totalorder %v380_v7, 0  ;;  %vm388_vm5 = vcmp.eq.s32.totalorder %v379_v8, 0  ;;  %vm391_vm6 = vcmp.eq.s32.totalorder %v382_v11, 0  ;;  %v361_v8 = vld [vmem:[%s1230_s30 + $0x10] sm:$0xff]  ;;  %p941_p1 = pnand %p940_p0, %p1131_p6 }
  0x2a   : > { %v521_v29 = vsel %vm389_vm4, 1, %v1035_v0  ;;  %v520_v30 = vsel %vm388_vm5, 1, %v1035_v0  ;;  %vm390_vm7 = vcmp.eq.s32.totalorder %v381_v12, 0  ;;  %v523_v31 = vsel %vm391_vm6, 1, %v1035_v0  ;;  %p948_p5 = por %p947_p4, %p946_p3 }
  0x2b   : > { %v522_v32 = vsel %vm390_vm7, 1, %v1035_v0  ;;  %v352_v56 = vmul.f32 11.313708, %v344_v51  ;;  %v351_v57 = vmul.f32 11.313708, %v343_v52  ;;  %v359_v0 = vld [vmem:[%s1230_s30] sm:$0xff]  ;;  %v1244_v2 = vrot.slane %v383_v53, %v506_v54  ;;  %p942_p2 = pneg %p941_p1 }
  0x2c   : > { %v1247_v4 = vrot.slane %v383_v53, %v558_v55  ;;  %v353_v5 = vmul.f32 11.313708, %v345_v58  ;;  %v354_v9 = vmul.f32 11.313708, %v346_v1  ;;  %v355_v14 = vmul.f32 11.313708, %v347_v3 }
  0x2d   : > { %438 = vperm.xlu1 %922, %v415_v15   ;;  %435 = vperm.xlu0 %921, %v414_v16   ;;  %v368_v6 = vadd.f32 %v360_v63, %v352_v56  ;;  %v367_v7 = vadd.f32 %v359_v0, %v351_v57  ;;  %v348_v15 = vld [vmem:[%s1216_s15 + $0x28] sm:$0xff]  ;;  %v366_v63 = vld [vmem:[%s1230_s30 + $0x38] sm:$0xff]  ;;  %p949_p8 = pnand %p948_p5, %p942_p2 }
  0x31   : > { %476 = vperm.xlu1 %922, %v465_v17   ;;  %473 = vperm.xlu0 %921, %v464_v18   ;;  %v363_v18 = vld [vmem:[%s1230_s30 + $0x20] sm:$0xff] }
  0x35   : > { %482 = vperm.xlu1 %922, %v467_v19   ;;  %479 = vperm.xlu0 %921, %v466_v20   ;;  %v362_v19 = vld [vmem:[%s1230_s30 + $0x18] sm:$0xff] }
  0x39   : > { %488 = vperm.xlu1 %922, %v469_v21   ;;  %485 = vperm.xlu0 %921, %v468_v22   ;;  %v369_v22 = vadd.f32 %v361_v8, %v353_v5 }
  0x3d   : > { %494 = vperm.xlu1 %922, %v471_v23   ;;  %491 = vperm.xlu0 %921, %v470_v24  }
  0x41   : > { %528 = vperm.xlu1 %922, %v517_v25   ;;  %525 = vperm.xlu0 %921, %v516_v26   ;;  %v349_v25 = vld [vmem:[%s1216_s15 + $0x30] sm:$0xff]  ;;  %v356_v26 = vmul.f32 11.313708, %v348_v15 }
  0x45   : > { %534 = vperm.xlu1 %922, %v519_v27   ;;  %531 = vperm.xlu0 %921, %v518_v28  }
  0x49   : > { %540 = vperm.xlu1 %922, %v521_v29   ;;  %537 = vperm.xlu0 %921, %v520_v30   ;;  %v371_v30 = vadd.f32 %v363_v18, %v355_v14 }
  0x4d   : > { %546 = vperm.xlu1 %922, %v523_v31   ;;  %543 = vperm.xlu0 %921, %v522_v32   ;;  %v370_v31 = vadd.f32 %v362_v19, %v354_v9  ;;  %v364_v32 = vld [vmem:[%s1230_s30 + $0x28] sm:$0xff] }
  0x4e   : > { %v372_v47 = vadd.f32 %v364_v32, %v356_v26 }
  0xa0   : > { %v1194_v33 = vpop.permute.xlu1 %423  ;;  %v418_v34 = vpop.permute.xlu0 %417 }
  0xa1   : > { %vm440_vm8 = vcmp.eq.s32.totalorder %v418_v34, 1  ;;  %vm442_vm12 = vcmp.eq.s32.totalorder %v1194_v33, 1  ;;  %v350_v33 = vld [vmem:[%s1216_s15 + $0x38] sm:$0xff] }
  0xa2   : > { %v456_v10 = vsel %vm440_vm8, %v1233_v59, %v1235_v60  ;;  %v458_v27 = vsel %vm442_vm12, %v1233_v59, %v1235_v60  ;;  %v358_v52 = vmul.f32 11.313708, %v350_v33 }
  0xa4   : > { %v1196_v35 = vpop.permute.xlu1 %426  ;;  %v421_v36 = vpop.permute.xlu0 %420  ;;  %v374_v5 = vadd.f32 %v366_v63, %v358_v52 }
  0xa5   : > { %vm441_vm9 = vcmp.eq.s32.totalorder %v421_v36, 1  ;;  %vm443_vm0 = vcmp.eq.s32.totalorder %v1196_v35, 1 }
  0xa6   : > { %v457_v11 = vsel %vm441_vm9, %v1233_v59, %v1235_v60  ;;  %v459_v36 = vsel %vm443_vm0, %v1233_v59, %v1235_v60 }
  0xa8   : > { %v1198_v37 = vpop.permute.xlu1 %432  ;;  %v1200_v38 = vpop.permute.xlu0 %429 }
  0xa9   : > { %vm444_vm2 = vcmp.eq.s32.totalorder %v1200_v38, 1  ;;  %vm445_vm6 = vcmp.eq.s32.totalorder %v1198_v37, 1 }
  0xaa   : > { %v460_v35 = vsel %vm444_vm2, %v1233_v59, %v1235_v60  ;;  %v461_v38 = vsel %vm445_vm6, %v1233_v59, %v1235_v60 }
  0xac   : > { %v1203_v39 = vpop.permute.xlu1 %438  ;;  %v1205_v40 = vpop.permute.xlu0 %435 }
  0xad   : > { %vm446_vm8 = vcmp.eq.s32.totalorder %v1205_v40, 1  ;;  %vm447_vm12 = vcmp.eq.s32.totalorder %v1203_v39, 1 }
  0xae   : > { %v462_v56 = vsel %vm446_vm8, %v1233_v59, %v1235_v60  ;;  %v463_v39 = vsel %vm447_vm12, %v1233_v59, %v1235_v60 }
  0xb0   : > { %v477_v42 = vpop.permute.xlu1 %476  ;;  %v474_v43 = vpop.permute.xlu0 %473 }
  0xb1   : > { %vm497_vm10 = vcmp.eq.s32.totalorder %v477_v42, 1  ;;  %vm496_vm11 = vcmp.eq.s32.totalorder %v474_v43, 1  ;;  %v357_v42 = vmul.f32 11.313708, %v349_v25 }
  0xb2   : > { %v509_v16 = vsel %vm497_vm10, %v1244_v2, %v457_v11  ;;  %v508_v17 = vsel %vm496_vm11, %v1244_v2, %v456_v10 }
  0xb4   : > { %v1207_v45 = vpop.permute.xlu1 %482  ;;  %v1209_v46 = vpop.permute.xlu0 %479 }
  0xb5   : > { %vm498_vm15 = vcmp.eq.s32.totalorder %v1209_v46, 1  ;;  %vm499_vm1 = vcmp.eq.s32.totalorder %v1207_v45, 1  ;;  %v365_v46 = vld [vmem:[%s1230_s30 + $0x30] sm:$0xff]  ;;  %s1383_s30 = scalar_lea.hbm %s1451_s6, %s846_s16 }
  0xb6   : > { %v510_v34 = vsel %vm498_vm15, %v1244_v2, %v458_v27  ;;  %v511_v43 = vsel %vm499_vm1, %v1244_v2, %v459_v36  ;;  %v373_v53 = vadd.f32 %v365_v46, %v357_v42 }
  0xb8   : > { %v1218_v49 = vpop.permute.xlu1 %488  ;;  %v1220_v50 = vpop.permute.xlu0 %485 }
  0xb9   : > { %vm500_vm5 = vcmp.eq.s32.totalorder %v1220_v50, 1  ;;  %vm501_vm7 = vcmp.eq.s32.totalorder %v1218_v49, 1 }
  0xba   : > { %v512_v45 = vsel %vm500_vm5, %v1244_v2, %v460_v35  ;;  %v513_v40 = vsel %vm501_vm7, %v1244_v2, %v461_v38 }
  0xbc   : > { %v1237_v61 = vpop.permute.xlu1 %494  ;;  %v1239_v62 = vpop.permute.xlu0 %491 }
  0xbd   : > { %vm502_vm11 = vcmp.eq.s32.totalorder %v1239_v62, 1 }
  0xbe   : > { %v514_v62 = vsel %vm502_vm11, %v1244_v2, %v462_v56 }
  0xc0   : > { %v529_v12 = vpop.permute.xlu1 %528  ;;  %v526_v13 = vpop.permute.xlu0 %525 }
  0xc1   : > { %vm549_vm13 = vcmp.eq.s32.totalorder %v529_v12, 1  ;;  %vm548_vm14 = vcmp.eq.s32.totalorder %v526_v13, 1 }
  0xc2   : > { %v561_v20 = vsel %vm549_vm13, %v1247_v4, %v509_v16  ;;  %v560_v21 = vsel %vm548_vm14, %v1247_v4, %v508_v17  ;;  %vm503_vm13 = vcmp.eq.s32.totalorder %v1237_v61, 1 }
  0xc3   : > { %v1264_v23 = vadd.f32 %v561_v20, %v368_v6  ;;  %v1266_v24 = vadd.f32 %v560_v21, %v367_v7  ;;  %v515_v1 = vsel %vm503_vm13, %v1244_v2, %v463_v39 }
  0xc4   : > { %v535_v28 = vpop.permute.xlu1 %534  ;;  %v532_v29 = vpop.permute.xlu0 %531 }
  0xc5   : > { %vm551_vm3 = vcmp.eq.s32.totalorder %v535_v28, 1  ;;  %vm550_vm4 = vcmp.eq.s32.totalorder %v532_v29, 1  ;;  %578 = vadd.xlane.f32.xlu1 %v1264_v23  ;;  %576 = vadd.xlane.f32.xlu0 %v1266_v24 }
  0xc6   : > { %v562_v41 = vsel %vm550_vm4, %v1247_v4, %v510_v34  ;;  %v563_v51 = vsel %vm551_vm3, %v1247_v4, %v511_v43 }
  0xc7   : > { %v570_v44 = vadd.f32 %v562_v41, %v369_v22  ;;  %v571_v55 = vadd.f32 %v563_v51, %v370_v31 }
  0xc8   : > { %v541_v48 = vpop.permute.xlu1 %540  ;;  %v538_v50 = vpop.permute.xlu0 %537 }
  0xc9   : > { %vm553_vm9 = vcmp.eq.s32.totalorder %v541_v48, 1  ;;  %vm552_vm10 = vcmp.eq.s32.totalorder %v538_v50, 1  ;;  %580 = vadd.xlane.f32.xlu0 %v570_v44 }
  0xca   : > { %v564_v49 = vsel %vm552_vm10, %v1247_v4, %v512_v45  ;;  %v565_v37 = vsel %vm553_vm9, %v1247_v4, %v513_v40 }
  0xcb   : > { %v572_v54 = vadd.f32 %v564_v49, %v371_v30  ;;  %v573_v61 = vadd.f32 %v565_v37, %v372_v47 }
  0xcc   : > { %v547_v57 = vpop.permute.xlu1 %546  ;;  %v544_v58 = vpop.permute.xlu0 %543 }
  0xcd   : > { %vm555_vm14 = vcmp.eq.s32.totalorder %v547_v57, 1  ;;  %vm554_vm15 = vcmp.eq.s32.totalorder %v544_v58, 1  ;;  %584 = vadd.xlane.f32.xlu1 %v572_v54  ;;  %582 = vadd.xlane.f32.xlu0 %v571_v55 }
  0xce   : > { %v566_v0 = vsel %vm554_vm15, %v1247_v4, %v514_v62  ;;  %v567_v6 = vsel %vm555_vm14, %v1247_v4, %v515_v1  ;;  %v839_v1 = vld [vmem:[%s1450_s5] ss:$0 sm:$0xff] }
  0xcf   : > { %v574_v3 = vadd.f32 %v566_v0, %v373_v53  ;;  %v575_v7 = vadd.f32 %v567_v6, %v374_v5 }
  0xd1   : > { %588 = vadd.xlane.f32.xlu1 %v574_v3  ;;  %586 = vadd.xlane.f32.xlu0 %v573_v61 }
  0xd5   : > { %590 = vadd.xlane.f32.xlu0 %v575_v7 }
 0x152   : > { %v579_v8 = vpop.xlane.xlu1 %578  ;;  %v577_v9 = vpop.xlane.xlu0 %576 }
 0x153   : > { %v594_v10 = vmul.f32 0.0078125, %v579_v8  ;;  %v593_v11 = vmul.f32 0.0078125, %v577_v9 }
 0x155   : > { %v1322_v12 = vsub.f32 %v1264_v23, %v594_v10  ;;  %v1325_v59 = vsub.f32 %v1266_v24, %v593_v11 }
 0x156   : > { %v581_v60 = vpop.xlane.xlu0 %580 }
 0x157   : > { %v595_v2 = vmul.f32 0.0078125, %v581_v60  ;;  %v610_v13 = vmul.f32 %v1322_v12, %v1322_v12  ;;  %v609_v4 = vmul.f32 %v1325_v59, %v1325_v59 }
 0x159   : > { %v1331_v14 = vsub.f32 %v570_v44, %v595_v2  ;;  %619 = vadd.xlane.f32.xlu0 %v610_v13  ;;  %617 = vadd.xlane.f32.xlu1 %v609_v4 }
 0x15a   : > { %v585_v15 = vpop.xlane.xlu1 %584  ;;  %v583_v16 = vpop.xlane.xlu0 %582 }
 0x15b   : > { %v597_v17 = vmul.f32 0.0078125, %v585_v15  ;;  %v596_v18 = vmul.f32 0.0078125, %v583_v16  ;;  %v611_v19 = vmul.f32 %v1331_v14, %v1331_v14 }
 0x15d   : > { %v1335_v20 = vsub.f32 %v572_v54, %v597_v17  ;;  %v1337_v21 = vsub.f32 %v571_v55, %v596_v18  ;;  %621 = vadd.xlane.f32.xlu1 %v611_v19  ;;  %v838_v55 = vld [vmem:[%s1449_s4] ss:$0 sm:$0xff] }
 0x15e   : > { %v589_v22 = vpop.xlane.xlu1 %588  ;;  %v587_v23 = vpop.xlane.xlu0 %586 }
 0x15f   : > { %v599_v24 = vmul.f32 0.0078125, %v589_v22  ;;  %v598_v25 = vmul.f32 0.0078125, %v587_v23  ;;  %v613_v26 = vmul.f32 %v1335_v20, %v1335_v20  ;;  %v612_v27 = vmul.f32 %v1337_v21, %v1337_v21 }
 0x161   : > { %v1343_v28 = vsub.f32 %v574_v3, %v599_v24  ;;  %v1345_v29 = vsub.f32 %v573_v61, %v598_v25  ;;  %625 = vadd.xlane.f32.xlu1 %v613_v26  ;;  %623 = vadd.xlane.f32.xlu0 %v612_v27 }
 0x162   : > { %v591_v30 = vpop.xlane.xlu0 %590 }
 0x163   : > { %v600_v31 = vmul.f32 0.0078125, %v591_v30  ;;  %v615_v32 = vmul.f32 %v1343_v28, %v1343_v28  ;;  %v614_v34 = vmul.f32 %v1345_v29, %v1345_v29 }
 0x165   : > { %v1351_v33 = vsub.f32 %v575_v7, %v600_v31  ;;  %629 = vadd.xlane.f32.xlu1 %v615_v32  ;;  %627 = vadd.xlane.f32.xlu0 %v614_v34 }
 0x167   : > { %v616_v36 = vmul.f32 %v1351_v33, %v1351_v33 }
 0x169   : > { %631 = vadd.xlane.f32.xlu0 %v616_v36 }
 0x1e6   : > { %v618_v41 = vpop.xlane.xlu1 %617  ;;  %v620_v42 = vpop.xlane.xlu0 %619 }
 0x1e7   : > { %v633_v43 = vmul.f32 0.0078125, %v618_v41  ;;  %v634_v44 = vmul.f32 0.0078125, %v620_v42 }
 0x1e9   : > { %v641_v46 = vadd.f32 1e-05, %v633_v43  ;;  %v642_v47 = vadd.f32 1e-05, %v634_v44 }
 0x1ea   : > { %v622_v35 = vpop.xlane.xlu1 %621 }
 0x1eb   : > { %923 = vrsqrt.f32 %v641_v46  ;;  %v635_v48 = vmul.f32 0.0078125, %v622_v35 }
 0x1ec   : > { %925 = vrsqrt.f32 %v642_v47 }
 0x1ed   : > { %v643_v50 = vadd.f32 1e-05, %v635_v48 }
 0x1ee   : > { %v626_v51 = vpop.xlane.xlu1 %625  ;;  %v624_v52 = vpop.xlane.xlu0 %623 }
 0x1ef   : > { %927 = vrsqrt.f32 %v643_v50  ;;  %v637_v45 = vmul.f32 0.0078125, %v626_v51  ;;  %v636_v38 = vmul.f32 0.0078125, %v624_v52 }
 0x1f1   : > { %v645_v49 = vadd.f32 1e-05, %v637_v45  ;;  %v644_v53 = vadd.f32 1e-05, %v636_v38 }
 0x1f2   : > { %v630_v40 = vpop.xlane.xlu1 %629  ;;  %v628_v54 = vpop.xlane.xlu0 %627 }
 0x1f3   : > { %929 = vrsqrt.f32 %v645_v49  ;;  %v639_v56 = vmul.f32 0.0078125, %v630_v40  ;;  %v638_v57 = vmul.f32 0.0078125, %v628_v54 }
 0x1f4   : > { %931 = vrsqrt.f32 %v644_v53 }
 0x1f5   : > { %v924_v58 = vpop.eup %923  ;;  %v647_v37 = vadd.f32 1e-05, %v639_v56  ;;  %v646_v63 = vadd.f32 1e-05, %v638_v57 }
 0x1f6   : > { %v926_v62 = vpop.eup %925  ;;  %v665_v39 = vmul.f32 %v924_v58, %v838_v55  ;;  %v632_v0 = vpop.xlane.xlu0 %631 }
 0x1f7   : > { %v666_v3 = vmul.f32 %v926_v62, %v838_v55  ;;  %933 = vrsqrt.f32 %v647_v37  ;;  %v640_v61 = vmul.f32 0.0078125, %v632_v0 }
 0x1f8   : > { %v673_v5 = vmul.f32 %v665_v39, %v1325_v59  ;;  %935 = vrsqrt.f32 %v646_v63 }
 0x1f9   : > { %v928_v6 = vpop.eup %927  ;;  %v674_v7 = vmul.f32 %v666_v3, %v1322_v12  ;;  %v648_v8 = vadd.f32 1e-05, %v640_v61 }
 0x1fa   : > { %v687_v9 = vadd.f32 %v839_v1, %v673_v5  ;;  %v667_v10 = vmul.f32 %v928_v6, %v838_v55 }
 0x1fb   : > { %v688_v11 = vadd.f32 %v839_v1, %v674_v7  ;;  %937 = vrsqrt.f32 %v648_v8 }
 0x1fc   : > { %695 = vst [vmem:[%s1366_s25] sm:$0xff] %v687_v9  ;;  %v675_v60 = vmul.f32 %v667_v10, %v1331_v14 }
 0x1fd   : > { %v930_v2 = vpop.eup %929  ;;  %696 = vst [vmem:[%s1366_s25 + $0x8] sm:$0xff] %v688_v11 }
 0x1fe   : > { %v932_v59 = vpop.eup %931  ;;  %v689_v13 = vadd.f32 %v839_v1, %v675_v60  ;;  %v669_v12 = vmul.f32 %v930_v2, %v838_v55 }
 0x1ff   : > { %v668_v4 = vmul.f32 %v932_v59, %v838_v55 }
 0x200   : > { %697 = vst [vmem:[%s1366_s25 + $0x10] sm:$0xff] %v689_v13  ;;  %v677_v15 = vmul.f32 %v669_v12, %v1335_v20 }
 0x201   : > { %v934_v16 = vpop.eup %933  ;;  %v676_v17 = vmul.f32 %v668_v4, %v1337_v21 }
 0x202   : > { %v936_v18 = vpop.eup %935  ;;  %v691_v19 = vadd.f32 %v839_v1, %v677_v15  ;;  %v671_v14 = vmul.f32 %v934_v16, %v838_v55 }
 0x203   : > { %v690_v22 = vadd.f32 %v839_v1, %v676_v17  ;;  %v670_v23 = vmul.f32 %v936_v18, %v838_v55 }
 0x204   : > { %699 = vst [vmem:[%s1366_s25 + $0x20] sm:$0xff] %v691_v19  ;;  %v679_v24 = vmul.f32 %v671_v14, %v1343_v28 }
 0x205   : > { %v938_v25 = vpop.eup %937  ;;  %698 = vst [vmem:[%s1366_s25 + $0x18] sm:$0xff] %v690_v22  ;;  %v678_v20 = vmul.f32 %v670_v23, %v1345_v29 }
 0x206   : > { %v693_v26 = vadd.f32 %v839_v1, %v679_v24  ;;  %v672_v21 = vmul.f32 %v938_v25, %v838_v55 }
 0x207   : > { %v692_v27 = vadd.f32 %v839_v1, %v678_v20 }
 0x208   : > { %701 = vst [vmem:[%s1366_s25 + $0x30] sm:$0xff] %v693_v26  ;;  %v680_v30 = vmul.f32 %v672_v21, %v1351_v33 }
 0x209   : > { %700 = vst [vmem:[%s1366_s25 + $0x28] sm:$0xff] %v692_v27 }
 0x20a   : > { %v694_v28 = vadd.f32 %v839_v1, %v680_v30 }
 0x20c   : > { %702 = vst [vmem:[%s1366_s25 + $0x38] sm:$0xff] %v694_v28 }
 0x20d   : > { %952 = shalt.err (!%p949_p8)
}
 0x20e   : > { %s953_s10 = scalar_lea.hbm %s1383_s30, 1024  ;;  %s957_s16 = scalar_lea.hbm %s1451_s6, 4096 }
 0x20f   : > { %p954_p9 = scmp.ne.s32.totalorder %s1383_s30, %s953_s10  ;;  %p958_p12 = scmp.lt.u32.totalorder %s1383_s30, %s1451_s6 }
 0x210   : > { %p959_p13 = scmp.lt.u32.totalorder %s957_s16, %s953_s10  ;;  %p961_p1 = scmp.lt.u32.totalorder %s953_s10, %s1383_s30 }
 0x211   : > { %p955_p10 = pnand %p954_p9, %p1131_p6 }
 0x212   : > { %p960_p0 = por %p959_p13, %p958_p12 }
 0x213   : > { %p956_p11 = pneg %p955_p10 }
 0x214   : > { %p962_p2 = por %p961_p1, %p960_p0 }
 0x216   : > { %p963_p3 = pnand %p962_p2, %p956_p11 }
 0x218   : > { %966 = shalt.err (!%p963_p3)
}
 0x219   : > { %s1037_s9 = smov 128   ;;  %s1038_s24 = smov 8  }
 0x21a   : > { %847 = dma.vmem_to_hbm [thread:$0]  (%p1131_p6), %s1388_s18, 1024, %s1383_s30, %s1393_s19, %s1037_s9, %s1037_s9, %s1038_s24  }
 0x21b PF: > { %p853_p4 = scmp.ge.s32.totalorder %s1033_s28, 2  ;;  %s734_s11 = sand.u32 1, %s1005_s21  }
 0x21c   : > { %s735_s12 = scalar_lea.sflag [#allocation3], %s734_s11 }
 0x21d   : > { %p850_p5 = pnand %p853_p4, %p1135_p7 }
 0x21f   : > { %1000 = dma.done.wait (!%p850_p5), %s735_s12, 1024  }
 0x220   : > { %1002 = vsyncadd (!%p850_p5), %s735_s12, 4294966272  ;;  %s19_s28 = sadd.s32 1, %s1033_s28   ;;  %s1454_s21 = smov %s1009_s22 }
 0x221   : > { %p16_p8 = scmp.ge.s32.totalorder %s19_s28, 6   ;;  %s1455_s22 = smov %s1013_s23 }
 0x222   : > { %s1456_s23 = smov %s1143_s17  ;;  %s1457_s24 = smov %s1025_s26 }
 0x223   : > { %s1458_s25 = smov %s1029_s27  ;;  %s1459_s26 = smov %s1462_s7 }
 0x224   : > { %s1460_s27 = smov %s1466_s8  ;;  %18 = sbr.rel (!%p16_p8) target bundleno = 5 (0x5), region = 85 }
 0x22b   :  { %740 = vsyncpa [#allocation3], 1 }
 0x22c   :  { %742 = vsyncpa [#allocation3 + $0x1], 1 }

</bundles_post_ra>
